<compile_context>
chip_gen: v7x
topology: tpu7x:2x2x1
jax: 0.10.0
libtpu: 0.0.40
codegen_flags: <defaults>
</compile_context>

<pallas_src>
import jax
import jax.numpy as jnp
from jax.experimental import pallas as pl
from jax.experimental.pallas import tpu as pltpu


def _round_up(v, m):
    return ((v + m - 1) // m) * m


def discriminator_kernel(x_ref, w1_ref, b1_ref, w2_ref, b2_ref, o_ref):
    # x_ref:  (TB, dim_z) f32/bf16   w1_ref: (dim_z, H) bf16   b1_ref: (1, H) f32
    # w2_ref: (1, H) f32             b2_ref: (1, 1) f32        o_ref:  (TB, 1) f32
    x = x_ref[...].astype(jnp.bfloat16)                      # no-op if x is bf16
    h = jnp.dot(x, w1_ref[...],
                preferred_element_type=jnp.float32) + b1_ref[...]
    h = jnp.maximum(h, 0.2 * h)                              # LeakyReLU(0.2), f32 VPU
    # Second layer (H -> 1): VPU multiply + lane reduce instead of a 99%-zero
    # padded MXU GEMM.
    y = jnp.sum(h * w2_ref[...], axis=-1, keepdims=True) + b2_ref[...]
    o_ref[...] = y.astype(o_ref.dtype)


def discriminator_forward(x, w1, b1_row, w2_row, b2, *, tb=2048):
    """Pallas forward for the inner discriminator MLP.

    x: (B, dim_z) f32 or bf16; w1: (dim_z, H) bf16; b1_row: (1, H) f32;
    w2_row: (1, H) f32; b2: (1, 1) f32.  Returns (B, 1) f32 logits.
    """
    B, dim_z = x.shape
    H = w1.shape[1]

    # Batch tile: large enough to amortize ~0.35us per-step overhead, but small
    # enough to give >= 2 grid steps (v7x dual-TC + pipelining).  Always a
    # multiple of 8 and never (much) larger than the batch.
    TB = min(tb, _round_up(pl.cdiv(B, 2), 128))
    TB = max(8, min(TB, _round_up(B, 8)))
    grid = (pl.cdiv(B, TB),)

    cost = pl.CostEstimate(
        flops=2 * B * dim_z * H + 3 * B * H,
        transcendentals=0,
        bytes_accessed=(B * dim_z * x.dtype.itemsize     # x read
                        + dim_z * H * 2 + H * 4 + H * 4 + 4   # resident params
                        + B * 4),                          # logit write
    )

    return pl.pallas_call(
        discriminator_kernel,
        out_shape=jax.ShapeDtypeStruct((B, 1), jnp.float32),
        grid_spec=pltpu.PrefetchScalarGridSpec(
            num_scalar_prefetch=0,
            grid=grid,
            in_specs=[
                pl.BlockSpec((TB, dim_z), lambda i: (i, 0)),   # x tiled on batch
                pl.BlockSpec((dim_z, H), lambda i: (0, 0)),    # resident weights
                pl.BlockSpec((1, H), lambda i: (0, 0)),
                pl.BlockSpec((1, H), lambda i: (0, 0)),
                pl.BlockSpec((1, 1), lambda i: (0, 0)),
            ],
            out_specs=pl.BlockSpec((TB, 1), lambda i: (i, 0)),  # real logits only
        ),
        compiler_params=pltpu.CompilerParams(
            dimension_semantics=("parallel",),   # batch axis over both TCs (v7x)
        ),
        cost_estimate=cost,
    )(x, w1, b1_row, w2_row, b2)


class PallasDiscriminator:
    """Mirrors Discriminator(dis, dim_z): builds the inner net, forward(x) = m(x)."""

    # TODO(synk): `dis` is a constructor argument in the PyTorch spec; a canonical
    # latent-space 2-layer MLP discriminator is instantiated here in its place.

    def __init__(self, dim_z, hidden=256, key=None, batch_tile=2048):
        self.dim_z = dim_z
        self.hidden = hidden
        self.batch_tile = batch_tile
        key = jax.random.PRNGKey(42) if key is None else key
        k1, k2, k3, k4 = jax.random.split(key, 4)

        # Deterministic synthetic init (scaled normal, akin to PyTorch Linear init).
        # GEMM1 weights stored bf16 (native MXU rate); everything touched by the
        # epilogue stays f32 (v5e VPU has no bf16 path).
        self.w1 = (jax.random.normal(k1, (dim_z, hidden), jnp.float32)
                   * (1.0 / jnp.sqrt(dim_z))).astype(jnp.bfloat16)
        self.b1_row = (jax.random.normal(k2, (hidden,), jnp.float32) * 0.01
                       ).reshape(1, hidden)
        self.w2_row = (jax.random.normal(k3, (hidden,), jnp.float32)
                       * (1.0 / jnp.sqrt(hidden))).reshape(1, hidden)
        self.b2 = (jax.random.normal(k4, (1,), jnp.float32) * 0.01).reshape(1, 1)

    def __call__(self, x):
        # x: (B, dim_z) latent batch (f32 or bf16) -> (B, 1) real/fake logits.
        return discriminator_forward(
            x, self.w1, self.b1_row, self.w2_row, self.b2, tb=self.batch_tile)


if __name__ == "__main__":
    dim_z = 128     # multiple of 128: full MXU contraction width on GEMM 1
    hidden = 256
    batch = 8       # small demo batch (multiple of 8 sublanes)

    key = jax.random.PRNGKey(0)
    x = jax.random.normal(key, (batch, dim_z), jnp.float32)

    disc = PallasDiscriminator(dim_z=dim_z, hidden=hidden)
    out = disc(x)
    out = jax.block_until_ready(out)

    # Reference check in plain JAX (same math / same bf16 operand casts).
    h_ref = jnp.dot(x.astype(jnp.bfloat16), disc.w1,
                    preferred_element_type=jnp.float32) + disc.b1_row
    h_ref = jnp.maximum(h_ref, 0.2 * h_ref)
    y_ref = jnp.sum(h_ref * disc.w2_row, axis=-1, keepdims=True) + disc.b2

    assert out.shape == (batch, 1)
    assert jnp.allclose(out, y_ref, atol=1e-3, rtol=1e-3)

    print("KERNEL_OK")
</pallas_src>

<mosaic_0001>
module attributes {stable_mosaic.version = 11 : i64} {
  func.func @discriminator_kernel(%arg0: i32, %arg1: memref<8x128xf32, #tpu.memory_space<vmem>>, %arg2: memref<128x256xbf16, #tpu.memory_space<vmem>>, %arg3: memref<1x256xf32, #tpu.memory_space<vmem>>, %arg4: memref<1x256xf32, #tpu.memory_space<vmem>>, %arg5: memref<1x1xf32, #tpu.memory_space<vmem>>, %arg6: memref<8x1xf32, #tpu.memory_space<vmem>>) attributes {dimension_semantics = [#tpu.dimension_semantics<parallel>], iteration_bounds = array<i64: 1>, scalar_prefetch = 0 : i64, scratch_operands = 0 : i64, tpu.core_type = #tpu.core_type<tc>, window_params = [{transform_indices = @transform_0, window_bounds = array<i64: 8, 128>}, {pipeline_mode = #tpu.pipeline_mode<synchronous>, transform_indices = @transform_1, window_bounds = array<i64: 128, 256>}, {pipeline_mode = #tpu.pipeline_mode<synchronous>, transform_indices = @transform_2, window_bounds = array<i64: 1, 256>}, {pipeline_mode = #tpu.pipeline_mode<synchronous>, transform_indices = @transform_3, window_bounds = array<i64: 1, 256>}, {pipeline_mode = #tpu.pipeline_mode<synchronous>, transform_indices = @transform_4, window_bounds = array<i64: 1, 1>}, {transform_indices = @transform_5, window_bounds = array<i64: 8, 1>}]} {
    %c0 = arith.constant 0 : index
    %c0_0 = arith.constant 0 : index
    %0 = vector.load %arg1[%c0, %c0_0] : memref<8x128xf32, #tpu.memory_space<vmem>>, vector<8x128xf32>
    %1 = arith.truncf %0 : vector<8x128xf32> to vector<8x128xbf16>
    %c0_1 = arith.constant 0 : index
    %c0_2 = arith.constant 0 : index
    %2 = vector.load %arg2[%c0_1, %c0_2] : memref<128x256xbf16, #tpu.memory_space<vmem>>, vector<128x256xbf16>
    %cst = arith.constant dense<0.000000e+00> : vector<8x256xf32>
    %3 = tpu.matmul %1, %2, %cst {dimension_numbers = #tpu.dot_dimension_numbers<[1], [0], [0], [1], [0, 0, 1, 1], [], []>} : vector<8x128xbf16>, vector<128x256xbf16>, vector<8x256xf32> -> vector<8x256xf32>
    %c0_3 = arith.constant 0 : index
    %c0_4 = arith.constant 0 : index
    %4 = vector.load %arg3[%c0_3, %c0_4] : memref<1x256xf32, #tpu.memory_space<vmem>>, vector<1x256xf32>
    %5 = vector.broadcast %4 : vector<1x256xf32> to vector<8x256xf32>
    %6 = arith.addf %3, %5 : vector<8x256xf32>
    %cst_5 = arith.constant 2.000000e-01 : f32
    %7 = vector.broadcast %cst_5 : f32 to vector<8x256xf32>
    %8 = arith.mulf %7, %6 : vector<8x256xf32>
    %9 = arith.maximumf %6, %8 : vector<8x256xf32>
    %c0_6 = arith.constant 0 : index
    %c0_7 = arith.constant 0 : index
    %10 = vector.load %arg4[%c0_6, %c0_7] : memref<1x256xf32, #tpu.memory_space<vmem>>, vector<1x256xf32>
    %11 = vector.broadcast %10 : vector<1x256xf32> to vector<8x256xf32>
    %12 = arith.mulf %9, %11 : vector<8x256xf32>
    %cst_8 = arith.constant dense<0.000000e+00> : vector<8xf32>
    %13 = vector.multi_reduction <add>, %12, %cst_8 [1] : vector<8x256xf32> to vector<8xf32>
    %14 = vector.shape_cast %13 : vector<8xf32> to vector<8x1xf32>
    %c0_9 = arith.constant 0 : index
    %c0_10 = arith.constant 0 : index
    %15 = vector.load %arg5[%c0_9, %c0_10] : memref<1x1xf32, #tpu.memory_space<vmem>>, vector<1x1xf32>
    %16 = vector.broadcast %15 : vector<1x1xf32> to vector<8x1xf32>
    %17 = arith.addf %14, %16 : vector<8x1xf32>
    %c0_11 = arith.constant 0 : index
    %c0_12 = arith.constant 0 : index
    %18 = vector.load %arg6[%c0_11, %c0_12] : memref<8x1xf32, #tpu.memory_space<vmem>>, vector<8x1xf32>
    tpu.vector_store %arg6[%c0_11, %c0_12], %17 {strides = array<i32>} : memref<8x1xf32, #tpu.memory_space<vmem>>, vector<8x1xf32>,
    return
  }
  func.func @transform_0(%arg0: i32) -> (i32, i32) {
    %c0_i32 = arith.constant 0 : i32
    %c0_i32_0 = arith.constant 0 : i32
    return %arg0, %c0_i32 : i32, i32
  }
  func.func @transform_1(%arg0: i32) -> (i32, i32) {
    %c0_i32 = arith.constant 0 : i32
    %c0_i32_0 = arith.constant 0 : i32
    %c0_i32_1 = arith.constant 0 : i32
    return %c0_i32, %c0_i32_0 : i32, i32
  }
  func.func @transform_2(%arg0: i32) -> (i32, i32) {
    %c0_i32 = arith.constant 0 : i32
    %c0_i32_0 = arith.constant 0 : i32
    %c0_i32_1 = arith.constant 0 : i32
    return %c0_i32, %c0_i32_0 : i32, i32
  }
  func.func @transform_3(%arg0: i32) -> (i32, i32) {
    %c0_i32 = arith.constant 0 : i32
    %c0_i32_0 = arith.constant 0 : i32
    %c0_i32_1 = arith.constant 0 : i32
    return %c0_i32, %c0_i32_0 : i32, i32
  }
  func.func @transform_4(%arg0: i32) -> (i32, i32) {
    %c0_i32 = arith.constant 0 : i32
    %c0_i32_0 = arith.constant 0 : i32
    %c0_i32_1 = arith.constant 0 : i32
    return %c0_i32, %c0_i32_0 : i32, i32
  }
  func.func @transform_5(%arg0: i32) -> (i32, i32) {
    %c0_i32 = arith.constant 0 : i32
    %c0_i32_0 = arith.constant 0 : i32
    return %arg0, %c0_i32 : i32, i32
  }
}

</mosaic_0001>

<bundles_post_ra>
// kernel: tpu_custom_call.1
= control target key start
LH: loop header
LB: loop body
LE: loop exit
PB: predicated region body
PF: predicated region fallthrough
CT: control target
= control target key end

     0   :  { %s409_s0 = inlined_call_operand.hbm [shape: f32[8,128], index: 0, kind: input, shape index: {}]   ;;  %s410_s1 = inlined_call_operand.hbm [shape: bf16[128,256], index: 1, kind: input, shape index: {}]   ;;  %s411_s2 = inlined_call_operand.vmem [shape: f32[1,256], index: 2, kind: input, shape index: {}]   ;;  %s412_s3 = inlined_call_operand.vmem [shape: f32[1,256], index: 3, kind: input, shape index: {}]   ;;  %s413_s4 = inlined_call_operand.<no memory space> [shape: f32[1,1], index: 4, kind: input, shape index: {}]   ;;  %s414_s5 = inlined_call_operand.vmem [shape: f32[8,1], index: 5, kind: output, shape index: {}]  }
   0x1   :  { %v10_v0 = vstv %s413_s4 }
   0x2   :  { %11 = vst [vmem:[#allocation2] sm:$0x1] %v10_v0 }
   0x3   :  { %12 = vsyncpa [#allocation4], 0 }
   0x4   :  { %13 = vsyncpa [#allocation6], 0  ;;  %s331_s20 = smov [#allocation3]   ;;  %s332_s22 = smov [#allocation5]  }
   0x5   :  { %s20_s21 = sshll.u32 %s331_s20, 4  ;;  %s29_s23 = sshll.u32 %s332_s22, 4  ;;  %s21_s21 = int_to_ptr.vmem [resolvable:$true] %s20_s21  ;;  %s369_s23 = int_to_ptr.vmem [resolvable:$true] %s29_s23 }
   0x6   :  { %s283_s26 = scalar_lea.hbm %s409_s0, 128 }
   0x7   :  { %p284_p0 = scmp.ne.s32.totalorder %s409_s0, %s283_s26  ;;  %p287_p1 = scmp.lt.u32.totalorder %s283_s26, %s409_s0 }
   0x9   :  { %p289_p2 = pnand %p287_p1, %p284_p0 }
   0xb   :  { %292 = shalt.err (!%p289_p2)
}
   0xc   :  { %s293_s30 = scalar_lea.vmem %s21_s21, 128  ;;  %p298_p4 = scmp.lt.s32.totalorder %s21_s21, %s21_s21 }
   0xd   :  { %p294_p3 = scmp.ne.s32.totalorder %s21_s21, %s293_s30  ;;  %p299_p5 = scmp.lt.s32.totalorder %s293_s30, %s293_s30 }
   0xf   :  { %p300_p6 = por %p299_p5, %p298_p4 }
  0x11   :  { %p301_p7 = pnand %p300_p6, %p294_p3 }
  0x13   :  { %304 = shalt.err (!%p301_p7)
}
  0x14   :  { %23 = dma.hbm_to_vmem [thread:$0]  %s409_s0, 128, %s21_s21, [#allocation4]  }
  0x15   :  { %s305_s10 = scalar_lea.hbm %s410_s1, 2048 }
  0x16   :  { %p306_p8 = scmp.ne.s32.totalorder %s410_s1, %s305_s10  ;;  %p309_p9 = scmp.lt.u32.totalorder %s305_s10, %s410_s1 }
  0x18   :  { %p311_p10 = pnand %p309_p9, %p306_p8 }
  0x1a   :  { %314 = shalt.err (!%p311_p10)
}
  0x1b   :  { %s315_s15 = scalar_lea.vmem %s369_s23, 2048  ;;  %p320_p12 = scmp.lt.s32.totalorder %s369_s23, %s369_s23 }
  0x1c   :  { %p316_p11 = scmp.ne.s32.totalorder %s369_s23, %s315_s15  ;;  %p321_p13 = scmp.lt.s32.totalorder %s315_s15, %s315_s15 }
  0x1e   :  { %p322_p0 = por %p321_p13, %p320_p12 }
  0x20   :  { %p323_p1 = pnand %p322_p0, %p316_p11 }
  0x22   :  { %326 = shalt.err (!%p323_p1)
}
  0x23   :  { %s333_s0 = smov 128   ;;  %s334_s16 = smov 8  }
  0x24   :  { %35 = dma.hbm_to_vmem [thread:$0]  %s410_s1, 2048, %s369_s23, [#allocation6], %s333_s0, %s333_s0, %s334_s16  }
  0x25   :  { %327 = dma.done.wait [#allocation4], 128  }
  0x26   :  { %328 = vsyncadd [#allocation4], 4294967168 }
  0x27   :  { %329 = dma.done.wait [#allocation6], 2048  }
  0x28   :  { %330 = vsyncadd [#allocation6], 4294965248  ;;  %v335_v1 = vmov 0   ;;  %v259_v2 = vld [vmem:[#allocation5 + $0x4] ss:$8 sps:$4 sm:$0xff]   ;;  %v49_v18 = vld [vmem:[#allocation3] sm:$0xff]  ;;  %v69_v20 = vlaneseq }
  0x29   :  { %191 = vmatprep.mubr.bf16.mxu0 %v335_v1  ;;  %v261_v3 = vld [vmem:[#allocation5] ss:$8 sps:$4 sm:$0xff]   ;;  %159 = vmatprep.subr.bf16.mxu0 %v259_v2  ;;  %v262_v4 = vld [vmem:[#allocation5 + $0x14] ss:$8 sps:$4 sm:$0xff]   ;;  %v264_v5 = vld [vmem:[#allocation5 + $0x10] ss:$8 sps:$4 sm:$0xff]   ;;  %v50_v19 = vpack.c.bf16 %v49_v18, %v49_v18 }
  0x2a   :  { %160 = vmatpush1.bf16.msra.mxu0 %v261_v3  ;;  %v265_v6 = vld [vmem:[#allocation5 + $0x24] ss:$8 sps:$4 sm:$0xff]   ;;  %v267_v7 = vld [vmem:[#allocation5 + $0x20] ss:$8 sps:$4 sm:$0xff]   ;;  %v268_v8 = vld [vmem:[#allocation5 + $0x34] ss:$8 sps:$4 sm:$0xff]  }
  0x2b   :  { %161 = vmatprep.subr.bf16.mxu0 %v262_v4  ;;  %v270_v9 = vld [vmem:[#allocation5 + $0x30] ss:$8 sps:$4 sm:$0xff]   ;;  %v271_v10 = vld [vmem:[#allocation5 + $0x44] ss:$8 sps:$4 sm:$0xff]   ;;  %v273_v11 = vld [vmem:[#allocation5 + $0x40] ss:$8 sps:$4 sm:$0xff]  }
  0x2c   :  { %v274_v12 = vld [vmem:[#allocation5 + $0x54] ss:$8 sps:$4 sm:$0xff]   ;;  %v276_v13 = vld [vmem:[#allocation5 + $0x50] ss:$8 sps:$4 sm:$0xff]   ;;  %v277_v14 = vld [vmem:[#allocation5 + $0x64] ss:$8 sps:$4 sm:$0xff]  }
  0x2d   :  { %v279_v15 = vld [vmem:[#allocation5 + $0x60] ss:$8 sps:$4 sm:$0xff]   ;;  %v280_v16 = vld [vmem:[#allocation5 + $0x74] ss:$8 sps:$4 sm:$0xff]   ;;  %v282_v17 = vld [vmem:[#allocation5 + $0x70] ss:$8 sps:$4 sm:$0xff]  }
  0x2e   :  { %162 = vmatpush1.bf16.msra.mxu0 %v264_v5  ;;  %v70_v21 = vshrl.u32 %v69_v20, 7  ;;  %v67_v23 = vld [vmem:[%s411_s2] sm:$0x3]  ;;  %vm229_vm0 = vcmask 7168  }
  0x2f   :  { %163 = vmatprep.subr.bf16.mxu0 %v265_v6  ;;  %v204_v28 = vld [vmem:[%s412_s3] sm:$0x3] }
  0x30   :  { %v71_v22 = vsub.s32 0, %v70_v21  ;;  %v75_v24 = vsub.s32 1, %v70_v21  ;;  %v253_v43 = vld [vmem:[#allocation2] ss:$0 sm:$0xff] }
  0x32   :  { %164 = vmatpush1.bf16.msra.mxu0 %v267_v7  ;;  %v72_v25 = vrot.slane %v67_v23, %v71_v22  ;;  %v76_v26 = vrot.slane %v67_v23, %v75_v24  ;;  %v209_v35 = vrot.slane %v204_v28, %v71_v22  ;;  %v213_v37 = vrot.slane %v204_v28, %v75_v24 }
  0x33   :  { %165 = vmatprep.subr.bf16.mxu0 %v268_v8 }
  0x36   :  { %166 = vmatpush1.bf16.msra.mxu0 %v270_v9 }
  0x37   :  { %167 = vmatprep.subr.bf16.mxu0 %v271_v10 }
  0x3a   :  { %168 = vmatpush1.bf16.msra.mxu0 %v273_v11 }
  0x3b   :  { %169 = vmatprep.subr.bf16.mxu0 %v274_v12 }
  0x3e   :  { %170 = vmatpush1.bf16.msra.mxu0 %v276_v13 }
  0x3f   :  { %171 = vmatprep.subr.bf16.mxu0 %v277_v14 }
  0x42   :  { %172 = vmatpush1.bf16.msra.mxu0 %v279_v15 }
  0x43   :  { %173 = vmatprep.subr.bf16.mxu0 %v280_v16 }
  0x46   :  { %174 = vmatpush1.bf16.msra.mxu0 %v282_v17 }
  0x49   :  { %192 = vmatmul.mubr.bf16.vlgmr.msra.gmra.mrb[0].mxu0 %v50_v19 }
 0x11c   :  { %v193_v27 = vpop.f32.mrb[0].mxu0 }
 0x11d   :  { %v194_v29 = vadd.f32 %v193_v27, %v72_v25  ;;  %v195_v30 = vpop.f32.mrb[1].mxu0 }
 0x11e   :  { %v196_v31 = vadd.f32 %v195_v30, %v76_v26  ;;  %v197_v32 = vpop.f32.mrb[2].mxu0 }
 0x11f   :  { %v200_v33 = vmul.f32 0.2, %v194_v29  ;;  %v198_v34 = vpop.f32.mrb[3].mxu0 }
 0x120   :  { %v201_v36 = vmul.f32 0.2, %v196_v31 }
 0x121   :  { %v202_v38 = vmax.f32 %v194_v29, %v200_v33 }
 0x122   :  { %v203_v39 = vmax.f32 %v196_v31, %v201_v36 }
 0x123   :  { %v216_v40 = vmul.f32 %v209_v35, %v202_v38 }
 0x124   :  { %v217_v41 = vmul.f32 %v213_v37, %v203_v39 }
 0x126   :  { %v218_v42 = vadd.f32 %v217_v41, %v216_v40 }
 0x128   :  { %219 = vadd.xlane.f32.xlu0 %v218_v42 }
 0x1b5   :  { %v220_v44 = vpop.xlane.xlu0 %219 }
 0x1b6   :  { %v228_v45 = vadd.f32 %v253_v43, %v220_v44 }
 0x1b8   :  { %230 = vst.msk [vmem:[%s414_s5] sm:$0xff] %vm229_vm0, %v228_v45 }
 0x1b9   :  { %235 = vsyncpa [#allocation4], 1 }
 0x1ba   :  { %236 = vsyncpa [#allocation6], 1 }

</bundles_post_ra>
